<compile_context>
chip_gen: v7x
topology: tpu7x:2x2x1
jax: 0.10.0
libtpu: 0.0.40
codegen_flags: <defaults>
</compile_context>

<pallas_src>
import functools

import jax
import jax.numpy as jnp
from jax import lax
from jax.experimental import pallas as pl
from jax.experimental.pallas import tpu as pltpu

# Module hyper-parameters (deterministic, from __init__ defaults).
SHARPE_WEIGHT = 0.1
DOWNSIDE_WEIGHT = 0.2
TRANSACTION_COST = 0.001
RISK_FREE_RATE = 0.02 / 252.0

LANES = 128
NUM_CORES = 2   # leading 'parallel' grid axis (uses both TCs on v7x; harmless on 1-TC chips)


def _financial_loss_kernel(carry_ref, pred_ref, targ_ref, ret_ref, out_ref, *,
                           T, chunk_elems, chunks_per_core):
    core = pl.program_id(0)
    c = pl.program_id(1)
    g = core * chunks_per_core + c          # global chunk index

    @pl.when(c == 0)
    def _init():
        out_ref[...] = jnp.zeros_like(out_ref)

    pred = pred_ref[...]                    # (R, 128) f32
    targ = targ_ref[...]
    ret = ret_ref[...]
    R = pred.shape[0]

    # ---- base MSE partial sums (zero-padded tail contributes exactly 0) ----
    d = pred - targ
    d2 = jnp.sum(d * d, axis=0, keepdims=True)                       # (1, 128)

    # ---- positions / strategy returns ----
    positions = jnp.tanh(pred)
    strategy = positions * ret

    # downside partial (padded tail: tanh(0)*0 == 0 -> contributes 0)
    down = jnp.where(strategy < 0.0, strategy, 0.0)
    dn2 = jnp.sum(down * down, axis=0, keepdims=True)                # (1, 128)

    # ---- torch.diff(positions) under the time-major (R, 128) layout ----
    #   prev[r, l>=1] = positions[r, l-1]          (lane shift via static slices)
    #   prev[r>=1, 0] = positions[r-1, 127]        (previous row's last lane)
    #   prev[0, 0]    = carry (tanh of the element before this chunk; chunk 0
    #                   carries its own first element -> diff at index 0 is 0,
    #                   matching torch.diff / net_returns[0] being unadjusted).
    carry = carry_ref[g]                                             # SMEM scalar (already tanh'd)
    shifted = jnp.concatenate([positions[:, :1], positions[:, :LANES - 1]], axis=1)
    col0 = jnp.concatenate(
        [jnp.full((1, 1), carry, dtype=positions.dtype),
         positions[:-1, LANES - 1:]], axis=0)                        # (R, 1)
    lane = lax.broadcasted_iota(jnp.int32, (1, LANES), 1)
    prev = jnp.where(lane == 0, col0, shifted)

    tcost = jnp.abs(positions - prev) * TRANSACTION_COST
    excess = strategy - tcost - RISK_FREE_RATE

    def _accumulate(ex):
        ex1 = jnp.sum(ex, axis=0, keepdims=True)                     # (1, 128)
        ex2 = jnp.sum(ex * ex, axis=0, keepdims=True)                # (1, 128)
        out_ref[...] += jnp.concatenate([d2, ex1, ex2, dn2], axis=0)[None]

    # Only chunks that reach past T pay for the padded-tail index mask
    # (tcost / risk-free offset make padded entries nonzero in `excess`).
    needs_mask = (g + 1) * chunk_elems > T

    @pl.when(needs_mask)
    def _masked():
        row = lax.broadcasted_iota(jnp.int32, (R, 1), 0)
        tidx = g * chunk_elems + row * LANES + lane                  # broadcasts to (R, 128)
        _accumulate(jnp.where(tidx < T, excess, 0.0))

    @pl.when(jnp.logical_not(needs_mask))
    def _unmasked():
        _accumulate(excess)


def financial_loss(predictions, targets, returns, *, chunk_rows=8192):
    """predictions/targets/returns: (T, 1) or (T,) float arrays. Returns scalar f32."""
    p = jnp.asarray(predictions, jnp.float32).reshape(-1)
    t = jnp.asarray(targets, jnp.float32).reshape(-1)
    r = jnp.asarray(returns, jnp.float32).reshape(-1)
    T = int(p.shape[0])

    # Chunk sizing: up to chunk_rows (rows,128) rows per grid step, multiple of
    # 8 sublanes, shrinking for small T; total chunks padded to NUM_CORES.
    rows_needed = max(1, pl.cdiv(T, LANES))
    R = min(int(chunk_rows), rows_needed)
    R = max(8, pl.cdiv(R, 8) * 8)
    chunk_elems = R * LANES
    num_chunks = max(1, pl.cdiv(T, chunk_elems))
    chunks_per_core = pl.cdiv(num_chunks, NUM_CORES)
    total_chunks = chunks_per_core * NUM_CORES
    rows_total = total_chunks * R
    Tp = rows_total * LANES

    p_p = jnp.pad(p, (0, Tp - T))
    t_p = jnp.pad(t, (0, Tp - T))
    r_p = jnp.pad(r, (0, Tp - T))
    p2 = p_p.reshape(rows_total, LANES)
    t2 = t_p.reshape(rows_total, LANES)
    r2 = r_p.reshape(rows_total, LANES)

    # Per-chunk carry = tanh(pred just before the chunk's first element); chunk 0
    # carries its own first element (diff at global index 0 is exactly zero).
    # tanh applied here (tiny XLA op) so the kernel never tanh's sparse data.
    last_per_chunk = p2.reshape(total_chunks, R, LANES)[:, -1, -1]   # (total_chunks,)
    carry = jnp.tanh(jnp.concatenate([p_p[:1], last_per_chunk[:-1]]))

    kernel = functools.partial(_financial_loss_kernel, T=T,
                               chunk_elems=chunk_elems,
                               chunks_per_core=chunks_per_core)

    partials = pl.pallas_call(
        kernel,
        out_shape=jax.ShapeDtypeStruct((NUM_CORES, 4, LANES), jnp.float32),
        grid=(NUM_CORES, chunks_per_core),
        in_specs=[
            pl.BlockSpec(memory_space=pltpu.MemorySpace.SMEM),       # per-chunk tanh'd carry
            pl.BlockSpec((R, LANES), lambda core, c: (core * chunks_per_core + c, 0)),
            pl.BlockSpec((R, LANES), lambda core, c: (core * chunks_per_core + c, 0)),
            pl.BlockSpec((R, LANES), lambda core, c: (core * chunks_per_core + c, 0)),
        ],
        out_specs=pl.BlockSpec((1, 4, LANES), lambda core, c: (core, 0, 0)),
        compiler_params=pltpu.CompilerParams(
            dimension_semantics=("parallel", "arbitrary"),
            vmem_limit_bytes=48 * 1024 * 1024),
        cost_estimate=pl.CostEstimate(
            flops=32 * Tp, transcendentals=Tp, bytes_accessed=12 * Tp),
    )(carry, p2, t2, r2)

    # ---- finalize in the wrapper: one tiny reduction + scalar math ----
    sums = jnp.sum(partials, axis=(0, 2))            # (4,): d2, ex, ex2, dn2
    s_d2, s_ex, s_ex2, s_dn2 = sums[0], sums[1], sums[2], sums[3]
    base = s_d2 / T
    mean_ex = s_ex / T
    # one-pass unbiased variance (torch.std default, N-1 denominator)
    var = (s_ex2 - s_ex * s_ex / T) / (T - 1)
    std = jnp.sqrt(jnp.maximum(var, 0.0))
    sharpe = -mean_ex / (std + 1e-8)
    ddev = jnp.sqrt(s_dn2 / T + 1e-8)
    return base + SHARPE_WEIGHT * sharpe + DOWNSIDE_WEIGHT * ddev


def _reference(predictions, targets, returns):
    # Pure-JAX reference mirroring the PyTorch forward (two-pass std, torch semantics).
    p = jnp.asarray(predictions, jnp.float32).reshape(-1)
    t = jnp.asarray(targets, jnp.float32).reshape(-1)
    r = jnp.asarray(returns, jnp.float32).reshape(-1)
    base = jnp.mean((p - t) ** 2)
    pos = jnp.tanh(p)
    strat = pos * r
    tc = jnp.abs(jnp.diff(pos)) * TRANSACTION_COST
    net = strat.at[1:].add(-tc)
    ex = net - RISK_FREE_RATE
    sharpe = -jnp.mean(ex) / (jnp.std(ex, ddof=1) + 1e-8)
    down = jnp.where(strat < 0, strat, 0.0)
    ddev = jnp.sqrt(jnp.mean(down ** 2) + 1e-8)
    return base + SHARPE_WEIGHT * sharpe + DOWNSIDE_WEIGHT * ddev


if __name__ == "__main__":
    key = jax.random.PRNGKey(0)
    k1, k2, k3 = jax.random.split(key, 3)

    # Primary case: single (T, 1) sequence, T = 128 (one real chunk, one padded).
    T = 128
    predictions = 0.5 * jax.random.normal(k1, (T, 1), dtype=jnp.float32)
    targets = 0.5 * jax.random.normal(k2, (T, 1), dtype=jnp.float32)
    returns = 0.01 * jax.random.normal(k3, (T, 1), dtype=jnp.float32)

    loss = jax.block_until_ready(financial_loss(predictions, targets, returns))
    ref = jax.block_until_ready(_reference(predictions, targets, returns))
    assert jnp.allclose(loss, ref, rtol=1e-4, atol=1e-6), (loss, ref)

    # Multi-chunk case: non-multiple-of-128 length with a small forced chunk so
    # both cores iterate several chunks (carry across chunk and core boundaries,
    # masked + unmasked accumulation paths).
    T2 = 2100
    k4, k5, k6 = jax.random.split(k3, 3)
    p2 = 0.5 * jax.random.normal(k4, (T2, 1), dtype=jnp.float32)
    t2 = 0.5 * jax.random.normal(k5, (T2, 1), dtype=jnp.float32)
    r2 = 0.01 * jax.random.normal(k6, (T2, 1), dtype=jnp.float32)
    loss2 = jax.block_until_ready(financial_loss(p2, t2, r2, chunk_rows=8))
    ref2 = jax.block_until_ready(_reference(p2, t2, r2))
    assert jnp.allclose(loss2, ref2, rtol=1e-4, atol=1e-6), (loss2, ref2)

    # Default-chunk case with a ragged tail (R > 8 rows per chunk, masked chunk).
    T3 = 5000
    k7, k8, k9 = jax.random.split(k6, 3)
    p3 = 0.5 * jax.random.normal(k7, (T3, 1), dtype=jnp.float32)
    t3 = 0.5 * jax.random.normal(k8, (T3, 1), dtype=jnp.float32)
    r3 = 0.01 * jax.random.normal(k9, (T3, 1), dtype=jnp.float32)
    loss3 = jax.block_until_ready(financial_loss(p3, t3, r3))
    ref3 = jax.block_until_ready(_reference(p3, t3, r3))
    assert jnp.allclose(loss3, ref3, rtol=1e-4, atol=1e-6), (loss3, ref3)

    print("KERNEL_OK")
</pallas_src>

<mosaic_0001>
module attributes {stable_mosaic.version = 11 : i64} {
  func.func @_financial_loss_kernel(%arg0: i32, %arg1: i32, %arg2: memref<2xf32, #tpu.memory_space<smem>>, %arg3: memref<8x128xf32, #tpu.memory_space<vmem>>, %arg4: memref<8x128xf32, #tpu.memory_space<vmem>>, %arg5: memref<8x128xf32, #tpu.memory_space<vmem>>, %arg6: memref<1x4x128xf32, #tpu.memory_space<vmem>>) attributes {dimension_semantics = [#tpu.dimension_semantics<parallel>, #tpu.dimension_semantics<arbitrary>], iteration_bounds = array<i64: 2, 1>, scalar_prefetch = 0 : i64, scratch_operands = 0 : i64, tpu.core_type = #tpu.core_type<tc>, window_params = [{transform_indices = @transform_0, window_bounds = array<i64: 2>}, {transform_indices = @transform_1, window_bounds = array<i64: 8, 128>}, {transform_indices = @transform_2, window_bounds = array<i64: 8, 128>}, {transform_indices = @transform_3, window_bounds = array<i64: 8, 128>}, {transform_indices = @transform_4, window_bounds = array<i64: 1, 4, 128>}]} {
    %c1_i32 = arith.constant 1 : i32
    %0 = arith.muli %arg0, %c1_i32 : i32
    %1 = arith.addi %0, %arg1 : i32
    %c0_i32 = arith.constant 0 : i32
    %2 = arith.cmpi eq, %arg1, %c0_i32 : i32
    %3 = arith.extui %2 : i1 to i32
    %c0_i32_0 = arith.constant 0 : i32
    %4 = arith.cmpi ne, %3, %c0_i32_0 : i32
    scf.if %4 {
      %cst_15 = arith.constant 0.000000e+00 : f32
      %52 = vector.broadcast %cst_15 : f32 to vector<1x4x128xf32>
      %c0_16 = arith.constant 0 : index
      %c0_17 = arith.constant 0 : index
      %c0_18 = arith.constant 0 : index
      %53 = vector.load %arg6[%c0_16, %c0_17, %c0_18] : memref<1x4x128xf32, #tpu.memory_space<vmem>>, vector<1x4x128xf32>
      tpu.vector_store %arg6[%c0_16, %c0_17, %c0_18], %52 {strides = array<i32>} : memref<1x4x128xf32, #tpu.memory_space<vmem>>, vector<1x4x128xf32>,
    } else {
    }
    %c0 = arith.constant 0 : index
    %c0_1 = arith.constant 0 : index
    %5 = vector.load %arg3[%c0, %c0_1] : memref<8x128xf32, #tpu.memory_space<vmem>>, vector<8x128xf32>
    %c0_2 = arith.constant 0 : index
    %c0_3 = arith.constant 0 : index
    %6 = vector.load %arg4[%c0_2, %c0_3] : memref<8x128xf32, #tpu.memory_space<vmem>>, vector<8x128xf32>
    %c0_4 = arith.constant 0 : index
    %c0_5 = arith.constant 0 : index
    %7 = vector.load %arg5[%c0_4, %c0_5] : memref<8x128xf32, #tpu.memory_space<vmem>>, vector<8x128xf32>
    %8 = arith.subf %5, %6 : vector<8x128xf32>
    %9 = arith.mulf %8, %8 : vector<8x128xf32>
    %cst = arith.constant dense<0.000000e+00> : vector<128xf32>
    %10 = vector.multi_reduction <add>, %9, %cst [0] : vector<8x128xf32> to vector<128xf32>
    %11 = vector.shape_cast %10 : vector<128xf32> to vector<1x128xf32>
    %12 = math.tanh %5 : vector<8x128xf32>
    %13 = arith.mulf %12, %7 : vector<8x128xf32>
    %cst_6 = arith.constant 0.000000e+00 : f32
    %14 = vector.broadcast %cst_6 : f32 to vector<8x128xf32>
    %15 = arith.cmpf olt, %13, %14 : vector<8x128xf32>
    %cst_7 = arith.constant 0.000000e+00 : f32
    %16 = vector.broadcast %cst_7 : f32 to vector<8x128xf32>
    %17 = arith.select %15, %13, %16 : vector<8x128xi1>, vector<8x128xf32>
    %18 = arith.mulf %17, %17 : vector<8x128xf32>
    %cst_8 = arith.constant dense<0.000000e+00> : vector<128xf32>
    %19 = vector.multi_reduction <add>, %18, %cst_8 [0] : vector<8x128xf32> to vector<128xf32>
    %20 = vector.shape_cast %19 : vector<128xf32> to vector<1x128xf32>
    %21 = arith.index_cast %1 : i32 to index
    %22 = memref.load %arg2[%21] : memref<2xf32, #tpu.memory_space<smem>>
    %23 = vector.extract_strided_slice %12 {offsets = [0, 0], sizes = [8, 1], strides = [1, 1]} : vector<8x128xf32> to vector<8x1xf32>
    %24 = vector.extract_strided_slice %12 {offsets = [0, 0], sizes = [8, 127], strides = [1, 1]} : vector<8x128xf32> to vector<8x127xf32>
    %25 = tpu.concatenate %23, %24 in 1 : vector<8x1xf32>, vector<8x127xf32> -> vector<8x128xf32>
    %26 = vector.broadcast %22 : f32 to vector<1x1xf32>
    %27 = vector.extract_strided_slice %12 {offsets = [0, 127], sizes = [7, 1], strides = [1, 1]} : vector<8x128xf32> to vector<7x1xf32>
    %28 = tpu.concatenate %26, %27 in 0 : vector<1x1xf32>, vector<7x1xf32> -> vector<8x1xf32>
    %29 = tpu.iota {dimensions = array<i32: 1>} : vector<1x128xi32>
    %c0_i32_9 = arith.constant 0 : i32
    %30 = vector.broadcast %c0_i32_9 : i32 to vector<1x128xi32>
    %31 = arith.cmpi eq, %29, %30 : vector<1x128xi32>
    %32 = vector.shape_cast %31 : vector<1x128xi1> to vector<1x128xi1>
    %33 = vector.broadcast %32 : vector<1x128xi1> to vector<8x128xi1>
    %34 = vector.shape_cast %28 : vector<8x1xf32> to vector<8x1xf32>
    %35 = vector.broadcast %34 : vector<8x1xf32> to vector<8x128xf32>
    %36 = arith.select %33, %35, %25 : vector<8x128xi1>, vector<8x128xf32>
    %37 = arith.subf %12, %36 : vector<8x128xf32>
    %38 = math.absf %37 : vector<8x128xf32>
    %cst_10 = arith.constant 1.000000e-03 : f32
    %39 = vector.broadcast %cst_10 : f32 to vector<8x128xf32>
    %40 = arith.mulf %38, %39 : vector<8x128xf32>
    %41 = arith.subf %13, %40 : vector<8x128xf32>
    %cst_11 = arith.constant 7.9365076E-5 : f32
    %42 = vector.broadcast %cst_11 : f32 to vector<8x128xf32>
    %43 = arith.subf %41, %42 : vector<8x128xf32>
    %c1_i32_12 = arith.constant 1 : i32
    %44 = arith.addi %1, %c1_i32_12 : i32
    %c1024_i32 = arith.constant 1024 : i32
    %45 = arith.muli %44, %c1024_i32 : i32
    %c128_i32 = arith.constant 128 : i32
    %46 = arith.cmpi sgt, %45, %c128_i32 : i32
    %47 = arith.extui %46 : i1 to i32
    %c0_i32_13 = arith.constant 0 : i32
    %48 = arith.cmpi ne, %47, %c0_i32_13 : i32
    scf.if %48 {
      %52 = tpu.iota {dimensions = array<i32: 0>} : vector<8x1xi32>
      %c1024_i32_15 = arith.constant 1024 : i32
      %53 = arith.muli %1, %c1024_i32_15 : i32
      %c128_i32_16 = arith.constant 128 : i32
      %54 = vector.broadcast %c128_i32_16 : i32 to vector<8x1xi32>
      %55 = arith.muli %52, %54 : vector<8x1xi32>
      %56 = vector.broadcast %53 : i32 to vector<8x1xi32>
      %57 = arith.addi %56, %55 : vector<8x1xi32>
      %58 = vector.broadcast %57 : vector<8x1xi32> to vector<8x128xi32>
      %59 = vector.broadcast %29 : vector<1x128xi32> to vector<8x128xi32>
      %60 = arith.addi %58, %59 : vector<8x128xi32>
      %c128_i32_17 = arith.constant 128 : i32
      %61 = vector.broadcast %c128_i32_17 : i32 to vector<8x128xi32>
      %62 = arith.cmpi slt, %60, %61 : vector<8x128xi32>
      %cst_18 = arith.constant 0.000000e+00 : f32
      %63 = vector.broadcast %cst_18 : f32 to vector<8x128xf32>
      %64 = arith.select %62, %43, %63 : vector<8x128xi1>, vector<8x128xf32>
      %cst_19 = arith.constant dense<0.000000e+00> : vector<128xf32>
      %65 = vector.multi_reduction <add>, %64, %cst_19 [0] : vector<8x128xf32> to vector<128xf32>
      %66 = vector.shape_cast %65 : vector<128xf32> to vector<1x128xf32>
      %67 = arith.mulf %64, %64 : vector<8x128xf32>
      %cst_20 = arith.constant dense<0.000000e+00> : vector<128xf32>
      %68 = vector.multi_reduction <add>, %67, %cst_20 [0] : vector<8x128xf32> to vector<128xf32>
      %69 = vector.shape_cast %68 : vector<128xf32> to vector<1x128xf32>
      %c0_21 = arith.constant 0 : index
      %c0_22 = arith.constant 0 : index
      %c0_23 = arith.constant 0 : index
      %70 = vector.load %arg6[%c0_21, %c0_22, %c0_23] : memref<1x4x128xf32, #tpu.memory_space<vmem>>, vector<1x4x128xf32>
      %71 = tpu.concatenate %11, %66, %69, %20 in 0 : vector<1x128xf32>, vector<1x128xf32>, vector<1x128xf32>, vector<1x128xf32> -> vector<4x128xf32>
      %72 = vector.shape_cast %71 : vector<4x128xf32> to vector<1x4x128xf32>
      %73 = arith.addf %70, %72 : vector<1x4x128xf32>
      %c0_24 = arith.constant 0 : index
      %c0_25 = arith.constant 0 : index
      %c0_26 = arith.constant 0 : index
      %74 = vector.load %arg6[%c0_24, %c0_25, %c0_26] : memref<1x4x128xf32, #tpu.memory_space<vmem>>, vector<1x4x128xf32>
      tpu.vector_store %arg6[%c0_24, %c0_25, %c0_26], %73 {strides = array<i32>} : memref<1x4x128xf32, #tpu.memory_space<vmem>>, vector<1x4x128xf32>,
    } else {
    }
    %true = arith.constant true
    %49 = arith.xori %46, %true : i1
    %50 = arith.extui %49 : i1 to i32
    %c0_i32_14 = arith.constant 0 : i32
    %51 = arith.cmpi ne, %50, %c0_i32_14 : i32
    scf.if %51 {
      %cst_15 = arith.constant dense<0.000000e+00> : vector<128xf32>
      %52 = vector.multi_reduction <add>, %43, %cst_15 [0] : vector<8x128xf32> to vector<128xf32>
      %53 = vector.shape_cast %52 : vector<128xf32> to vector<1x128xf32>
      %54 = arith.mulf %43, %43 : vector<8x128xf32>
      %cst_16 = arith.constant dense<0.000000e+00> : vector<128xf32>
      %55 = vector.multi_reduction <add>, %54, %cst_16 [0] : vector<8x128xf32> to vector<128xf32>
      %56 = vector.shape_cast %55 : vector<128xf32> to vector<1x128xf32>
      %c0_17 = arith.constant 0 : index
      %c0_18 = arith.constant 0 : index
      %c0_19 = arith.constant 0 : index
      %57 = vector.load %arg6[%c0_17, %c0_18, %c0_19] : memref<1x4x128xf32, #tpu.memory_space<vmem>>, vector<1x4x128xf32>
      %58 = tpu.concatenate %11, %53, %56, %20 in 0 : vector<1x128xf32>, vector<1x128xf32>, vector<1x128xf32>, vector<1x128xf32> -> vector<4x128xf32>
      %59 = vector.shape_cast %58 : vector<4x128xf32> to vector<1x4x128xf32>
      %60 = arith.addf %57, %59 : vector<1x4x128xf32>
      %c0_20 = arith.constant 0 : index
      %c0_21 = arith.constant 0 : index
      %c0_22 = arith.constant 0 : index
      %61 = vector.load %arg6[%c0_20, %c0_21, %c0_22] : memref<1x4x128xf32, #tpu.memory_space<vmem>>, vector<1x4x128xf32>
      tpu.vector_store %arg6[%c0_20, %c0_21, %c0_22], %60 {strides = array<i32>} : memref<1x4x128xf32, #tpu.memory_space<vmem>>, vector<1x4x128xf32>,
    } else {
    }
    return
  }
  func.func @transform_0(%arg0: i32, %arg1: i32) -> i32 {
    %c0_i32 = arith.constant 0 : i32
    %c0_i32_0 = arith.constant 0 : i32
    return %c0_i32 : i32
  }
  func.func @transform_1(%arg0: i32, %arg1: i32) -> (i32, i32) {
    %c1_i32 = arith.constant 1 : i32
    %0 = arith.muli %arg0, %c1_i32 : i32
    %1 = arith.addi %0, %arg1 : i32
    %c0_i32 = arith.constant 0 : i32
    %c0_i32_0 = arith.constant 0 : i32
    return %1, %c0_i32 : i32, i32
  }
  func.func @transform_2(%arg0: i32, %arg1: i32) -> (i32, i32) {
    %c1_i32 = arith.constant 1 : i32
    %0 = arith.muli %arg0, %c1_i32 : i32
    %1 = arith.addi %0, %arg1 : i32
    %c0_i32 = arith.constant 0 : i32
    %c0_i32_0 = arith.constant 0 : i32
    return %1, %c0_i32 : i32, i32
  }
  func.func @transform_3(%arg0: i32, %arg1: i32) -> (i32, i32) {
    %c1_i32 = arith.constant 1 : i32
    %0 = arith.muli %arg0, %c1_i32 : i32
    %1 = arith.addi %0, %arg1 : i32
    %c0_i32 = arith.constant 0 : i32
    %c0_i32_0 = arith.constant 0 : i32
    return %1, %c0_i32 : i32, i32
  }
  func.func @transform_4(%arg0: i32, %arg1: i32) -> (i32, i32, i32) {
    %c0_i32 = arith.constant 0 : i32
    %c0_i32_0 = arith.constant 0 : i32
    %c0_i32_1 = arith.constant 0 : i32
    return %arg0, %c0_i32, %c0_i32_0 : i32, i32, i32
  }
}

</mosaic_0001>

<bundles_post_ra>
// kernel: tpu_custom_call.1
= control target key start
LH: loop header
LB: loop body
LE: loop exit
PB: predicated region body
PF: predicated region fallthrough
CT: control target
= control target key end

     0   :  { %s1243_s0 = inlined_call_operand.hbm [shape: f32[2], index: 0, kind: input, shape index: {}]   ;;  %s1244_s1 = inlined_call_operand.hbm [shape: f32[16,128], index: 1, kind: input, shape index: {}]   ;;  %s1245_s2 = inlined_call_operand.hbm [shape: f32[16,128], index: 2, kind: input, shape index: {}]   ;;  %s1246_s3 = inlined_call_operand.hbm [shape: f32[16,128], index: 3, kind: input, shape index: {}]   ;;  %s1247_s4 = inlined_call_operand.hbm [shape: f32[2,4,128], index: 4, kind: output, shape index: {}]  }
   0x1   :  { %1260 = sst [smem:[#allocation20_spill]] %s1245_s2 }
   0x2   :  { %9 = vsyncpa [#allocation5], 0 }
   0x3   :  { %10 = vsyncpa [#allocation3], 0 }
   0x4   :  { %12 = vsyncpa [#allocation3 + $0x1], 0 }
   0x5   :  { %13 = vsyncpa [#allocation8], 0 }
   0x6   :  { %15 = vsyncpa [#allocation8 + $0x1], 0 }
   0x7   :  { %16 = vsyncpa [#allocation4], 0 }
   0x8   :  { %18 = vsyncpa [#allocation4 + $0x1], 0  ;;  %s934_s15 = smov 0   ;;  %s936_s16 = smov 0  }
   0x9   :  { %s938_s17 = smov 0   ;;  %s940_s18 = smov 0  }
   0xa   :  { %s942_s19 = smov 0   ;;  %s944_s20 = smov 0  }
   0xb LB: > { %1261 = sst [smem:[#allocation15_spill]] %s895_s19  ;;  %s36_s21 = sadd.s32 1, %s895_s19  ;;  %s899_s20 = sphi %s944_s20, %s24_s20   ;;  %s895_s19 = sphi %s942_s19, %s1288_s19   ;;  %s891_s18 = sphi %s940_s18, %s1287_s18   ;;  %s887_s17 = sphi %s938_s17, %s1291_s17   ;;  %s883_s16 = sphi %s936_s16, %s1290_s16   ;;  %s879_s15 = sphi %s934_s15, %s1289_s15  }
   0xc   : > { %1262 = sst [smem:[#allocation16_spill]] %s899_s20  ;;  %s66_s22 = sadd.s32 1, %s887_s17 }
   0xd   : > { %p38_p0 = scmp.ge.s32.totalorder %s36_s21, 2  ;;  %p1248_p1 = scmp.ne.s32.totalorder %s887_s17, %s883_s16 }
   0xe   : > { %p74_p2 = scmp.eq.s32.totalorder %s899_s20, 0  ;;  %p648_p5 = scmp.lt.s32.totalorder %s899_s20, 2 }
   0xf   : > { %s1293_s21 = smov (%p38_p0, %s36_s21), 0  ;;  %s194_s24 = sand.u32 1, %s887_s17  }
  0x10   : > { %1263 = sst [smem:[#allocation17_spill]] %s1293_s21  ;;  %p75_p4 = por %p74_p2, %p1248_p1 }
  0x11   : > { %s63_s23 = ssub.s32 %s895_s19, %s1293_s21  ;;  %s981_s25 = sshll.u32 %s194_s24, 3 }
  0x12   : > { %p64_p6 = scmp.eq.s32.totalorder %s63_s23, 0  ;;  %s984_s26 = sshll.u32 %s895_s19, 7 }
  0x13   : > { %p986_p7 = pnand %p648_p5, %p75_p4  ;;  %s213_s29 = sand.u32 1, %s899_s20  }
  0x14   : > { %s991_s28 = scalar_select %p64_p6, %s887_s17, %s66_s22  }
  0x15   : > { %s1264_s27 = scalar_select %p986_p7, 1, 0 }
  0x16   : > { %1265 = sst [smem:[#allocation18_spill]] %s991_s28  ;;  %s1266_s2 = sld [smem:[#allocation20_spill]] }
  0x17   : > { %s217_s7 = scalar_lea.vmem [#allocation7], %s981_s25  ;;  %s1003_s9 = scalar_lea.sflag [#allocation8], %s213_s29 }
  0x18   : > { %s225_s8 = sshll.u32 %s217_s7, 4  ;;  %p1009_p9 = pneg %p986_p7  ;;  %s1001_s8 = int_to_ptr.vmem [resolvable:$true] %s225_s8 }
  0x1c   : > { %s998_s6 = scalar_lea.hbm %s1266_s2, %s984_s26  ;;  %s711_s14 = scalar_lea.hbm %s1266_s2, 256 }
  0x1d   : > { %s706_s10 = scalar_lea.hbm %s998_s6, 128  ;;  %p712_p12 = scmp.lt.u32.totalorder %s998_s6, %s1266_s2 }
  0x1e   : > { %p707_p8 = scmp.ne.s32.totalorder %s998_s6, %s706_s10  ;;  %p713_p13 = scmp.lt.u32.totalorder %s711_s14, %s706_s10 }
  0x1f   : > { %p715_p2 = scmp.lt.u32.totalorder %s706_s10, %s998_s6 }
  0x20   : > { %p709_p10 = pnand %p1009_p9, %p707_p8  ;;  %p714_p0 = por %p713_p13, %p712_p12 }
  0x22   : > { %p710_p11 = pneg %p709_p10  ;;  %p716_p4 = por %p715_p2, %p714_p0 }
  0x24   : > { %p717_p5 = pnand %p716_p4, %p710_p11 }
  0x26   : > { %720 = shalt.err (!%p717_p5)
}
  0x27   : > { %s721_s29 = scalar_lea.vmem %s1001_s8, 128  ;;  %s901_s30 = smov [#allocation7]  }
  0x28   : > { %p722_p6 = scmp.ne.s32.totalorder %s1001_s8, %s721_s29  ;;  %s726_s5 = sshll.u32 %s901_s30, 4  ;;  %s727_s5 = int_to_ptr.vmem [resolvable:$false] %s726_s5 }
  0x29   : > { %s728_s7 = scalar_lea.vmem %s727_s5, 256  ;;  %p729_p3 = scmp.lt.s32.totalorder %s1001_s8, %s727_s5 }
  0x2a   : > { %p724_p8 = pnand %p722_p6, %p1009_p9  ;;  %p730_p1 = scmp.lt.s32.totalorder %s728_s7, %s721_s29 }
  0x2c   : > { %p725_p10 = pneg %p724_p8  ;;  %p731_p12 = por %p730_p1, %p729_p3 }
  0x2e   : > { %p732_p13 = pnand %p731_p12, %p725_p10 }
  0x30   : > { %735 = shalt.err (!%p732_p13)
}
  0x31   : > { %639 = dma.hbm_to_vmem [thread:$0]  (!%p986_p7), %s998_s6, 128, %s1001_s8, %s1003_s9  }
  0x32   : > { %s1034_s10 = sadd.s32 4294967295, %s899_s20   ;;  %s590_s12 = sadd.s32 4294967294, %s899_s20  }
  0x33   : > { %p79_p1 = scmp.ne.s32.totalorder %s883_s16, %s879_s15  ;;  %p1254_p3 = scmp.eq.s32.totalorder %s1034_s10, 0 }
  0x34   : > { %p159_p11 = scmp.eq.s32.totalorder %s1034_s10, 1  ;;  %p165_p0 = scmp.eq.s32.totalorder %s590_s12, 1 }
  0x35   : > { %p591_p2 = scmp.ge.s32.totalorder %s899_s20, 1  ;;  %p1044_p4 = por %p1254_p3, %p79_p1 }
  0x36   : > { %p1269_p5 = scmp.ne.s32.totalorder %s887_s17, %s883_s16  ;;  %p1055_p8 = por %p165_p0, %p79_p1 }
  0x37   : > { %s1268_s13 = scalar_select %p1044_p4, 1, 0 }
  0x38   : > { %p1051_p6 = por %p159_p11, %p1269_p5  ;;  %p172_p10 = scmp.lt.s32.totalorder %s899_s20, 3 }
  0x39   : > { %s1271_s8 = scalar_select %p1055_p8, 1, 0 }
  0x3a   : > { %s1270_s6 = scalar_select %p1051_p6, 1, 0 }
  0x3b   : > { %1272 = sst [smem:[#allocation19_spill]] %s1271_s8  ;;  %p1060_p12 = pnand %p591_p2, %p172_p10 }
  0x3c   : > { %s1068_s29 = scalar_lea.hbm %s1244_s1, %s984_s26  ;;  %s198_s30 = scalar_lea.vmem [#allocation6], %s981_s25 }
  0x3d   : > { %s1273_s14 = scalar_select %p1060_p12, 1, 0 }
  0x3e   : > { %p629_p13 = pneg %p1060_p12  ;;  %s206_s5 = sshll.u32 %s198_s30, 4  ;;  %s1073_s5 = int_to_ptr.vmem [resolvable:$true] %s206_s5 }
  0x3f   : > { %s1085_s23 = scalar_lea.hbm %s1246_s3, %s984_s26  ;;  %s195_s2 = scalar_lea.sflag [#allocation3], %s194_s24 }
  0x40   : > { %p1077_p1 = pnand %p629_p13, %p1254_p3  ;;  %s736_s21 = scalar_lea.hbm %s1068_s29, 128 }
  0x41   : > { %p737_p11 = scmp.ne.s32.totalorder %s1068_s29, %s736_s21  ;;  %s741_s28 = scalar_lea.hbm %s1244_s1, 256 }
  0x42   : > { %s1274_s7 = scalar_select %p1077_p1, 1, 0 }
  0x43   : > { %p739_p0 = pnand %p737_p11, %p1009_p9  ;;  %p742_p5 = scmp.lt.u32.totalorder %s1068_s29, %s1244_s1 }
  0x44   : > { %p743_p10 = scmp.lt.u32.totalorder %s741_s28, %s736_s21  ;;  %p745_p3 = scmp.lt.u32.totalorder %s736_s21, %s1068_s29 }
  0x45   : > { %p740_p2 = pneg %p739_p0 }
  0x46   : > { %p744_p13 = por %p743_p10, %p742_p5 }
  0x48   : > { %p746_p8 = por %p745_p3, %p744_p13 }
  0x4a   : > { %p747_p6 = pnand %p746_p8, %p740_p2 }
  0x4c   : > { %750 = shalt.err (!%p747_p6)
}
  0x4d   : > { %s751_s24 = scalar_lea.vmem %s1073_s5, 128  ;;  %s902_s19 = smov [#allocation6]  }
  0x4e   : > { %p752_p11 = scmp.ne.s32.totalorder %s1073_s5, %s751_s24  ;;  %s756_s26 = sshll.u32 %s902_s19, 4  ;;  %s757_s26 = int_to_ptr.vmem [resolvable:$false] %s756_s26 }
  0x4f   : > { %s758_s20 = scalar_lea.vmem %s757_s26, 256  ;;  %p759_p12 = scmp.lt.s32.totalorder %s1073_s5, %s757_s26 }
  0x50   : > { %p754_p0 = pnand %p752_p11, %p1009_p9  ;;  %p760_p1 = scmp.lt.s32.totalorder %s758_s20, %s751_s24 }
  0x52   : > { %p755_p4 = pneg %p754_p0  ;;  %p761_p5 = por %p760_p1, %p759_p12 }
  0x54   : > { %p762_p10 = pnand %p761_p5, %p755_p4 }
  0x56   : > { %765 = shalt.err (!%p762_p10)
}
  0x57   : > { %636 = dma.hbm_to_vmem [thread:$0]  (!%p986_p7), %s1068_s29, 128, %s1073_s5, %s195_s2  }
  0x58   : > { %s236_s21 = scalar_lea.vmem [#allocation9], %s981_s25  ;;  %s766_s22 = scalar_lea.hbm %s1243_s0, 16 }
  0x59   : > { %s244_s28 = sshll.u32 %s236_s21, 4  ;;  %p767_p3 = scmp.ne.s32.totalorder %s1243_s0, %s766_s22  ;;  %s245_s28 = int_to_ptr.vmem [resolvable:$true] %s244_s28 }
  0x5a   : > { %p1275_p6 = scmp.ne.s32.totalorder %s1274_s7, 0  ;;  %p773_p1 = scmp.lt.u32.totalorder %s766_s22, %s1243_s0 }
  0x5c   : > { %p768_p4 = pneg %p1275_p6 }
  0x5e   : > { %p769_p8 = pnand %p768_p4, %p767_p3 }
  0x60   : > { %p770_p12 = pneg %p769_p8 }
  0x62   : > { %p775_p2 = pnand %p773_p1, %p770_p12 }
  0x64   : > { %778 = shalt.err (!%p775_p2)
}
  0x65   : > { %s903_s2 = smov [#allocation2]   ;;  %s779_s5 = scalar_lea.hbm %s1085_s23, 128 }
  0x66   : > { %632 = dma.hbm_to_smem (!%p1275_p6), %s1243_s0, 16, %s903_s2, [#allocation5]  }
  0x67   : > { %p780_p13 = scmp.ne.s32.totalorder %s1085_s23, %s779_s5  ;;  %s784_s8 = scalar_lea.hbm %s1246_s3, 256 }
  0x68   : > { %p785_p5 = scmp.lt.u32.totalorder %s1085_s23, %s1246_s3  ;;  %p786_p10 = scmp.lt.u32.totalorder %s784_s8, %s779_s5 }
  0x69   : > { %p782_p11 = pnand %p780_p13, %p1009_p9  ;;  %p788_p4 = scmp.lt.u32.totalorder %s779_s5, %s1085_s23 }
  0x6a   : > { %p787_p3 = por %p786_p10, %p785_p5 }
  0x6b   : > { %p783_p0 = pneg %p782_p11 }
  0x6c   : > { %p789_p8 = por %p788_p4, %p787_p3 }
  0x6e   : > { %p790_p12 = pnand %p789_p8, %p783_p0 }
  0x70   : > { %793 = shalt.err (!%p790_p12)
}
  0x71   : > { %s794_s22 = scalar_lea.vmem %s245_s28, 128  ;;  %s904_s30 = smov [#allocation9]  }
  0x72   : > { %p795_p6 = scmp.ne.s32.totalorder %s245_s28, %s794_s22  ;;  %s799_s19 = sshll.u32 %s904_s30, 4  ;;  %s800_s19 = int_to_ptr.vmem [resolvable:$false] %s799_s19 }
  0x73   : > { %s801_s24 = scalar_lea.vmem %s800_s19, 256  ;;  %p802_p13 = scmp.lt.s32.totalorder %s245_s28, %s800_s19 }
  0x74   : > { %p797_p1 = pnand %p795_p6, %p1009_p9  ;;  %p803_p11 = scmp.lt.s32.totalorder %s801_s24, %s794_s22 }
  0x76   : > { %p798_p2 = pneg %p797_p1  ;;  %p804_p7 = por %p803_p11, %p802_p13 }
  0x78   : > { %p805_p5 = pnand %p804_p7, %p798_p2 }
  0x7a   : > { %808 = shalt.err (!%p805_p5)
}
  0x7b   : > { %p1276_p10 = scmp.ne.s32.totalorder %s1264_s27, 0  ;;  %p1277_p0 = scmp.ne.s32.totalorder %s1273_s14, 0 }
  0x7c   : > { %p1278_p9 = scmp.eq.s32.totalorder (!%p1277_p0), %s1034_s10, 0 }
  0x7d   : > { %642 = dma.hbm_to_vmem [thread:$0]  (!%p1276_p10), %s1085_s23, 128, %s245_s28, %s1003_s9  }
  0x7e   : > { %253 = sbr.rel (%p1277_p0) target bundleno = 477 (0x1dd), region = 36 }
  0x85   : > { %862 = dma.done.wait (%p1278_p9), [#allocation5], 16   ;;  %p1279_p3 = pmov %p1278_p9 }
  0x86   : > { %s1152_s11 = sand.u32 1, %s883_s16   ;;  %p1280_p7 = scmp.ne.s32.totalorder %s1268_s13, 0 }
  0x87   : > { %864 = vsyncadd (%p1279_p3), [#allocation5], 4294967280  ;;  %s1155_s26 = sshll.u32 %s1152_s11, 3  ;;  %s260_s27 = scalar_lea.sflag [#allocation3], %s1152_s11 }
  0x88   : > { %s263_s9 = scalar_lea.vmem [#allocation6], %s1155_s26 }
  0x89   : > { %866 = dma.done.wait (%p1280_p7), %s260_s27, 128  }
  0x8a   : > { %868 = vsyncadd (%p1280_p7), %s260_s27, 4294967168  ;;  %s268_s14 = sand.u32 1, %s1034_s10   ;;  %s272_s28 = scalar_lea.vmem [#allocation7], %s1155_s26 }
  0x8b   : > { %s269_s23 = scalar_lea.sflag [#allocation8], %s268_s14 }
  0x8c   : > { %870 = dma.done.wait (%p1280_p7), %s269_s23, 256  }
  0x8d   : > { %872 = vsyncadd (%p1280_p7), %s269_s23, 4294967040  ;;  %s281_s2 = scalar_lea.vmem [#allocation9], %s1155_s26 }
  0x8e   : > { %286 = sfence }
  0x8f   : > { %v326_v0 = vld [vmem:[%s263_s9] sm:$0xff]  ;;  %v327_v1 = vld [vmem:[%s272_s28] sm:$0xff]  ;;  %v905_v3 = vmov 0   ;;  %s906_s10 = smov 1   ;;  %s348_s13 = sld [smem:[#allocation2 + %s891_s18]]  ;;  %vm360_vm1 = vcmask 1040384   ;;  %v362_v27 = vlaneseq }
  0x90   : > { %704 = vtanh.f32 %v326_v0  ;;  %v329_v2 = vsub.f32 %v326_v0, %v327_v1  ;;  %703 = vset.pattern.permute.xlu0 %v905_v3  ;;  %v328_v13 = vld [vmem:[%s281_s2] sm:$0xff]  ;;  %s605_s25 = sshll.u32 %s1152_s11, 2  ;;  %s615_s29 = sshll.u32 %s891_s18, 10  ;;  %v907_v26 = vmov 0.0   ;;  %vm353_vm2 = vcmask 7168  }
  0x91   : > { %s1178_s5 = scalar_lea.vmem [#allocation10], %s605_s25  ;;  %s1181_s20 = sadd.s32 1024, %s615_s29  ;;  %v363_v28 = vand.u32 127, %v362_v27 }
  0x92   : > { %v330_v4 = vmul.f32 %v329_v2, %v329_v2  ;;  %325 = vst [vmem:[%s1178_s5] sm:$0xf] %v907_v26  ;;  %p608_p4 = scmp.le.s32.totalorder %s1181_s20, 128 }
  0x93   : > { %vm364_vm3 = vcmp.eq.s32.totalorder %v363_v28, 0  ;;  %v385_v38 = vshrl.u32 (!%p608_p4), %v362_v27, 7  ;;  %v388_v39 = vstv (!%p608_p4), %s615_s29  ;;  %vm408_vm5 = vcmask (!%p608_p4), 1041408  }
  0x94   : > { %v331_v5 = vrot.slane %v330_v4, 4  ;;  %vm410_vm6 = vcmask (!%p608_p4), 1042432  }
  0x95   : > { %v355_v15 = vstv %s348_s13  ;;  %v387_v40 = vmul.u32 (!%p608_p4), 128, %v385_v38 }
  0x96   : > { %v332_v6 = vadd.f32 %v331_v5, %v330_v4 }
  0x97   : > { %v389_v41 = vadd.s32 (!%p608_p4), %v388_v39, %v387_v40 }
  0x98   : > { %v333_v7 = vrot.slane %v332_v6, 2 }
  0x99   : > { %v390_v42 = vadd.s32 (!%p608_p4), %v389_v41, %v363_v28  ;;  %v406_v58 = vld [vmem:[%s1178_s5] sm:$0xf] (!%p608_p4) }
  0x9a   : > { %v705_v8 = vpop.eup %704  ;;  %v334_v9 = vadd.f32 %v333_v7, %v332_v6 }
  0x9b   : > { %v356_v10 = vrot.slane %v705_v8, 7  ;;  %350 = vrot.lane.b32.xlu1 %v705_v8, %s906_s10  ;;  %v338_v14 = vmul.f32 %v705_v8, %v328_v13  ;;  %vm391_vm4 = vcmp.lt.s32.totalorder (!%p608_p4), %v390_v42, 128 }
  0x9c   : > { %v335_v11 = vrot.slane %v334_v9, 1 }
  0x9d   : > { %357 = vrot.lane.b32.xlu0 %v356_v10, %s906_s10  ;;  %vm339_vm0 = vcmp.lt.f32.partialorder %v338_v14, 0.0 }
  0x9e   : > { %v1170_v12 = vadd.f32 %v335_v11, %v334_v9  ;;  %v340_v16 = vsel %vm339_vm0, %v338_v14, 0.0 }
  0x9f   : > { %v341_v17 = vmul.f32 %v340_v16, %v340_v16 }
  0xa1   : > { %v342_v20 = vrot.slane %v341_v17, 4 }
  0xa3   : > { %v343_v21 = vadd.f32 %v342_v20, %v341_v17 }
  0xa5   : > { %v344_v22 = vrot.slane %v343_v21, 2 }
  0xa7   : > { %v345_v23 = vadd.f32 %v344_v22, %v343_v21 }
  0xa9   : > { %v346_v24 = vrot.slane %v345_v23, 1 }
  0xab   : > { %v1176_v25 = vadd.f32 %v346_v24, %v345_v23 }
 0x10d   : > { %v351_v29 = vpop.permute.xlu1 %350 }
 0x10e   : > { %v354_v30 = vsel %vm353_vm2, %v705_v8, %v351_v29 }
 0x10f   : > { %v358_v18 = vpop.permute.xlu0 %357 }
 0x110   : > { %v361_v19 = vsel %vm360_vm1, %v355_v15, %v358_v18 }
 0x111   : > { %369 = vperm.xlu0 %703, %v361_v19  }
 0x190   : > { %v370_v31 = vpop.permute.xlu0 %369 }
 0x191   : > { %v372_v32 = vsel %vm364_vm3, %v370_v31, %v354_v30 }
 0x192   : > { %v373_v33 = vsub.f32 %v705_v8, %v372_v32 }
 0x194   : > { %v374_v34 = vand.u32 2147483647, %v373_v33  ;;  %383 = sbr.rel (%p608_p4) target bundleno = 432 (0x1b0), region = 60 }
 0x196   : > { %v375_v35 = vmul.f32 0.001, %v374_v34 }
 0x198   : > { %v376_v36 = vsub.f32 %v338_v14, %v375_v35 }
 0x19a   : > { %v606_v37 = vadd.f32 -7.9365076e-05, %v376_v36 }
 0x19c   : > { %v392_v43 = vsel %vm391_vm4, %v606_v37, 0.0 }
 0x19d   : > { %v393_v44 = vrot.slane %v392_v43, 4  ;;  %v399_v45 = vmul.f32 %v392_v43, %v392_v43 }
 0x19f   : > { %v394_v46 = vadd.f32 %v393_v44, %v392_v43  ;;  %v400_v47 = vrot.slane %v399_v45, 4 }
 0x1a1   : > { %v395_v48 = vrot.slane %v394_v46, 2  ;;  %v401_v49 = vadd.f32 %v400_v47, %v399_v45 }
 0x1a3   : > { %v396_v50 = vadd.f32 %v395_v48, %v394_v46  ;;  %v402_v51 = vrot.slane %v401_v49, 2 }
 0x1a5   : > { %v397_v52 = vrot.slane %v396_v50, 1  ;;  %v403_v53 = vadd.f32 %v402_v51, %v401_v49 }
 0x1a7   : > { %v398_v54 = vadd.f32 %v397_v52, %v396_v50  ;;  %v404_v55 = vrot.slane %v403_v53, 1 }
 0x1a9   : > { %v405_v56 = vadd.f32 %v404_v55, %v403_v53  ;;  %v407_v57 = vsel %vm360_vm1, %v1170_v12, %v398_v54 }
 0x1ab   : > { %v409_v59 = vsel %vm408_vm5, %v407_v57, %v405_v56 }
 0x1ac   : > { %v411_v60 = vsel %vm410_vm6, %v409_v59, %v1176_v25 }
 0x1ad   : > { %v412_v61 = vadd.f32 %v411_v60, %v406_v58 }
 0x1af   : > { %413 = vst [vmem:[%s1178_s5] sm:$0xf] %v412_v61 }
 0x1b0 PF: > { %p610_p8 = scmp.gt.s32.totalorder %s1181_s20, 128 }
 0x1b1   : > { %v418_v62 = vrot.slane (!%p610_p8), %v606_v37, 4  ;;  %v424_v63 = vmul.f32 (!%p610_p8), %v606_v37, %v606_v37  ;;  %vm433_vm7 = vcmask (!%p610_p8), 1041408   ;;  %vm435_vm8 = vcmask (!%p610_p8), 1042432  }
 0x1b2   : > { %417 = sbr.rel (%p610_p8) target bundleno = 452 (0x1c4), region = 64 }
 0x1b3   : > { %v419_v0 = vadd.f32 (!%p610_p8), %v606_v37, %v418_v62  ;;  %v425_v1 = vrot.slane (!%p610_p8), %v424_v63, 4 }
 0x1b5   : > { %v420_v2 = vrot.slane (!%p610_p8), %v419_v0, 2  ;;  %v426_v3 = vadd.f32 (!%p610_p8), %v425_v1, %v424_v63 }
 0x1b6   : > { %v431_v13 = vld [vmem:[%s1178_s5] sm:$0xf] (!%p610_p8) }
 0x1b7   : > { %v421_v4 = vadd.f32 (!%p610_p8), %v420_v2, %v419_v0  ;;  %v427_v5 = vrot.slane (!%p610_p8), %v426_v3, 2 }
 0x1b9   : > { %v422_v6 = vrot.slane %v421_v4, 1  ;;  %v428_v7 = vadd.f32 %v427_v5, %v426_v3 }
 0x1bb   : > { %v423_v8 = vadd.f32 %v422_v6, %v421_v4  ;;  %v429_v9 = vrot.slane %v428_v7, 1 }
 0x1bd   : > { %v430_v10 = vadd.f32 %v429_v9, %v428_v7  ;;  %v432_v11 = vsel %vm360_vm1, %v1170_v12, %v423_v8 }
 0x1bf   : > { %v434_v14 = vsel %vm433_vm7, %v432_v11, %v430_v10 }
 0x1c0   : > { %v436_v15 = vsel %vm435_vm8, %v434_v14, %v1176_v25 }
 0x1c1   : > { %v437_v16 = vadd.f32 %v436_v15, %v431_v13 }
 0x1c3   : > { %438 = vst [vmem:[%s1178_s5] sm:$0xf] %v437_v16 }
 0x1c4 PF: > { %s612_s21 = sshll.u32 %s891_s18, 6  ;;  %s453_s22 = sshll.u32 %s1178_s5, 4  ;;  %s454_s22 = int_to_ptr.vmem [resolvable:$true] %s453_s22 }
 0x1c5   : > { %s1199_s12 = scalar_lea.hbm %s1247_s4, %s612_s21  ;;  %s440_s30 = scalar_lea.sflag [#allocation4], %s1152_s11 }
 0x1c6   : > { %s809_s19 = scalar_lea.vmem %s454_s22, 64  ;;  %p1281_p6 = scmp.ne.s32.totalorder %s1270_s6, 0 }
 0x1c7   : > { %p810_p12 = scmp.ne.s32.totalorder %s454_s22, %s809_s19  ;;  %s908_s24 = smov [#allocation10]  }
 0x1c8   : > { %s813_s26 = sshll.u32 %s908_s24, 4  ;;  %s814_s26 = int_to_ptr.vmem [resolvable:$false] %s813_s26 }
 0x1c9   : > { %p811_p1 = pnand %p810_p12, %p1281_p6  ;;  %s815_s27 = scalar_lea.vmem %s814_s26, 128 }
 0x1ca   : > { %p816_p13 = scmp.lt.s32.totalorder %s454_s22, %s814_s26  ;;  %p817_p11 = scmp.lt.s32.totalorder %s815_s27, %s809_s19 }
 0x1cb   : > { %p812_p2 = pneg %p811_p1 }
 0x1cc   : > { %p818_p5 = por %p817_p11, %p816_p13 }
 0x1ce   : > { %p819_p10 = pnand %p818_p5, %p812_p2 }
 0x1d0   : > { %822 = shalt.err (!%p819_p10)
}
 0x1d1   : > { %s823_s18 = scalar_lea.hbm %s1199_s12, 64  ;;  %s827_s14 = scalar_lea.hbm %s1247_s4, 128 }
 0x1d2   : > { %p824_p0 = scmp.ne.s32.totalorder %s1199_s12, %s823_s18  ;;  %p828_p7 = scmp.lt.u32.totalorder %s1199_s12, %s1247_s4 }
 0x1d3   : > { %p829_p4 = scmp.lt.u32.totalorder %s827_s14, %s823_s18  ;;  %p831_p12 = scmp.lt.u32.totalorder %s823_s18, %s1199_s12 }
 0x1d4   : > { %p825_p9 = pnand %p824_p0, %p1281_p6 }
 0x1d5   : > { %p830_p8 = por %p829_p4, %p828_p7 }
 0x1d6   : > { %p826_p3 = pneg %p825_p9 }
 0x1d7   : > { %p832_p1 = por %p831_p12, %p830_p8 }
 0x1d9   : > { %p833_p2 = pnand %p832_p1, %p826_p3 }
 0x1db   : > { %836 = shalt.err (!%p833_p2)
}
 0x1dc   : > { %627 = dma.vmem_to_hbm [thread:$0]  (%p1281_p6), %s454_s22, 64, %s1199_s12, %s440_s30  }
 0x1dd PF: > { %s1282_s2 = sld [smem:[#allocation19_spill]]  ;;  %s1283_s10 = sld [smem:[#allocation16_spill]] }
 0x1de   : > { %s465_s13 = sand.u32 1, %s879_s15  }
 0x1df   : > { %s466_s25 = scalar_lea.sflag [#allocation4], %s465_s13 }
 0x1e3   : > { %p1284_p13 = scmp.ne.s32.totalorder %s1282_s2, 0  ;;  %p1285_p11 = scmp.ge.s32.totalorder %s1283_s10, 2 }
 0x1e5   : > { %p644_p5 = pnand %p1285_p11, %p1284_p13 }
 0x1e7   : > { %874 = dma.done.wait (!%p644_p5), %s466_s25, 64  }
 0x1e8   : > { %876 = vsyncadd (!%p644_p5), %s466_s25, 4294967232  ;;  %s24_s20 = sadd.s32 1, %s1283_s10   ;;  %s1286_s29 = sld [smem:[#allocation18_spill]] }
 0x1e9   : > { %p21_p10 = scmp.ge.s32.totalorder %s24_s20, 4   ;;  %s1287_s18 = sld [smem:[#allocation15_spill]] }
 0x1ea   : > { %s1288_s19 = sld [smem:[#allocation17_spill]]  ;;  %s1289_s15 = smov %s883_s16 }
 0x1eb   : > { %s1290_s16 = smov %s887_s17  ;;  %23 = sbr.rel (!%p21_p10) target bundleno = 11 (0xb), region = 122 }
 0x1ee   : > { %s1291_s17 = smov %s1286_s29 }
 0x1f2   :  { %471 = vsyncpa [#allocation3], 1 }
 0x1f3   :  { %473 = vsyncpa [#allocation3 + $0x1], 1 }
 0x1f4   :  { %474 = vsyncpa [#allocation8], 1 }
 0x1f5   :  { %476 = vsyncpa [#allocation8 + $0x1], 1 }
 0x1f6   :  { %477 = vsyncpa [#allocation4], 1 }
 0x1f7   :  { %479 = vsyncpa [#allocation4 + $0x1], 1 }
 0x1f8   :  { %480 = vsyncpa [#allocation5], 1 }
 0x1f9   :  { %482 = vsyncpa [#allocation5 + $0x1], 1 }

</bundles_post_ra>
